<compile_context>
chip_gen: v5e
topology: v5e:2x2
jax: 0.10.0
libtpu: 0.0.40
codegen_flags: <defaults>
</compile_context>

<pallas_src>
import functools

import jax
import jax.numpy as jnp
from jax.experimental import pallas as pl
from jax.experimental.pallas import tpu as pltpu

HIDDEN = 128


def _round_up(n, m):
    return ((n + m - 1) // m) * m


def _epilogue_dtype():
    """bf16 epilogues on bf16-VPU chips (v6e/v7x); f32 on v5e and older."""
    try:
        kind = jax.devices()[0].device_kind.lower()
    except Exception:
        return jnp.float32
    if any(t in kind for t in ("v2", "v3", "v4", "v5")):
        return jnp.float32
    return jnp.bfloat16


def value_net_kernel(x_ref, w1_ref, w2_ref, consts_ref, b3_ref, o_ref, *, act_dtype):
    # Transposed orientation: hidden on sublanes, batch on lanes. Every layer result is
    # (HIDDEN, TB), so the batch axis is lane-dense end-to-end.
    xb = x_ref[...].astype(jnp.bfloat16)                  # in-kernel cast (hidden under MXU/DMA)

    # Layer 1: h1^T = W1 @ x^T (contract the feature axis of both operands -> A@B^T MXU op).
    h1 = jax.lax.dot_general(w1_ref[...], xb, (((1,), (1,)), ((), ())),
                             preferred_element_type=jnp.float32)        # (H, TB) f32
    b1 = consts_ref[:, 0:1].astype(act_dtype)                           # (H, 1)
    h1 = jnp.maximum(h1.astype(act_dtype) + b1, 0.0)

    # Layer 2: h2^T = W2 @ h1^T.
    h2 = jnp.dot(w2_ref[...], h1.astype(jnp.bfloat16),
                 preferred_element_type=jnp.float32)                    # (H, TB) f32
    b2 = consts_ref[:, 1:2].astype(act_dtype)
    h2 = jnp.maximum(h2.astype(act_dtype) + b2, 0.0)

    # Layer 3 (128 -> 1): multiply by the w3 column and reduce over the sublane (hidden)
    # axis -> already a lane-dense (1, TB) row; no cross-lane XLU reduce, no relayout.
    w3 = consts_ref[:, 2:3]                                             # (H, 1) f32
    v = jnp.sum(h2.astype(jnp.float32) * w3, axis=0, keepdims=True)     # (1, TB) f32
    o_ref[...] = v + b3_ref[0]


def value_network_forward(x, params, *, batch_tile=1024):
    """x: [B, D] float32.  Returns [B, 1] float32 (the state value)."""
    w1, b1, w2, b2, w3, b3 = params
    B, D = x.shape

    # Tile selection: 128-multiples (MXU rows / lane-dense output); cap at ~B/2 so that
    # B > 128 always gives >= 2 tiles (both v7x TensorCores get work); tiny batches use a
    # single exact-shape tile.
    TB = min(_round_up(batch_tile, 128), max(128, _round_up((B + 1) // 2, 128)))
    if B <= TB:
        TB = B
    num_tiles = pl.cdiv(B, TB)

    # Resident operands (tiny, prepared once per call; x itself is untouched).
    w1b = w1.astype(jnp.bfloat16)                                        # (H, D)  = W1 (out, in)
    w2b = w2.astype(jnp.bfloat16)                                        # (H, H)
    consts = jnp.stack([b1, b2, w3], axis=1).astype(jnp.float32)         # (H, 3): [b1|b2|w3]
    b3v = jnp.asarray(b3, jnp.float32).reshape((1,))

    act_dtype = _epilogue_dtype()
    kernel = functools.partial(value_net_kernel, act_dtype=act_dtype)

    if num_tiles >= 3:
        # Deeper buffering on the single streamed operand only.
        x_spec = pl.BlockSpec((TB, D), lambda i: (i, 0), pipeline_mode=pl.Buffered(3))
    else:
        x_spec = pl.BlockSpec((TB, D), lambda i: (i, 0))

    out = pl.pallas_call(
        kernel,
        out_shape=jax.ShapeDtypeStruct((1, B), jnp.float32),             # lane-dense slab
        grid_spec=pltpu.PrefetchScalarGridSpec(
            num_scalar_prefetch=0,
            grid=(num_tiles,),
            in_specs=[
                x_spec,                                                   # x tile (streamed, f32)
                pl.BlockSpec((HIDDEN, D), lambda i: (0, 0)),              # W1 (resident)
                pl.BlockSpec((HIDDEN, HIDDEN), lambda i: (0, 0)),         # W2 (resident)
                pl.BlockSpec((HIDDEN, 3), lambda i: (0, 0)),              # [b1|b2|w3] columns
                pl.BlockSpec(memory_space=pltpu.MemorySpace.SMEM),        # b3 scalar
            ],
            out_specs=pl.BlockSpec((1, TB), lambda i: (0, i)),
        ),
        compiler_params=pltpu.CompilerParams(
            dimension_semantics=("parallel",)),
    )(x, w1b, w2b, consts, b3v)

    # Pure-metadata reshape of the (1, B) slab; no slice copy.
    # TODO(synk): consumers that accept a flat (B,) value could take out[0] directly.
    return out.reshape(B, 1)


def init_params(key, input_dim):
    """PyTorch-Linear-style init and layout: weights stored (out_features, in_features),
    uniform +-1/sqrt(fan_in)."""
    ks = jax.random.split(key, 6)

    def uniform(k, shape, fan_in):
        bound = 1.0 / jnp.sqrt(jnp.float32(fan_in))
        return jax.random.uniform(k, shape, jnp.float32, -bound, bound)

    w1 = uniform(ks[0], (HIDDEN, input_dim), input_dim)
    b1 = uniform(ks[1], (HIDDEN,), input_dim)
    w2 = uniform(ks[2], (HIDDEN, HIDDEN), HIDDEN)
    b2 = uniform(ks[3], (HIDDEN,), HIDDEN)
    w3 = uniform(ks[4], (HIDDEN,), HIDDEN)
    b3 = uniform(ks[5], (1,), HIDDEN)
    return (w1, b1, w2, b2, w3, b3)


def value_network_ref(x, params, *, act_dtype=jnp.float32):
    """Reference with the same precision strategy (bf16 MXU inputs, f32 accumulation,
    epilogues in act_dtype, final projection in f32)."""
    w1, b1, w2, b2, w3, b3 = params
    nt = (((1,), (1,)), ((), ()))                          # contract last dims (A @ B^T)
    xb = x.astype(jnp.bfloat16)
    h1 = jax.lax.dot_general(xb, w1.astype(jnp.bfloat16), nt,
                             preferred_element_type=jnp.float32)          # (B, H)
    h1 = jnp.maximum(h1.astype(act_dtype) + b1.astype(act_dtype), 0.0)
    h2 = jax.lax.dot_general(h1.astype(jnp.bfloat16), w2.astype(jnp.bfloat16), nt,
                             preferred_element_type=jnp.float32)          # (B, H)
    h2 = jnp.maximum(h2.astype(act_dtype) + b2.astype(act_dtype), 0.0)
    v = jnp.sum(h2.astype(jnp.float32) * w3.astype(jnp.float32)[None, :],
                axis=-1, keepdims=True) + b3
    return v


if __name__ == "__main__":
    key = jax.random.PRNGKey(0)
    k_x, k_x2, k_p = jax.random.split(key, 3)

    batch, input_dim = 8, 32
    params = init_params(k_p, input_dim)
    act_dtype = _epilogue_dtype()

    # Small batch (single exact tile).
    x = jax.random.normal(k_x, (batch, input_dim), jnp.float32)
    out = jax.block_until_ready(value_network_forward(x, params))
    ref = value_network_ref(x, params, act_dtype=act_dtype)
    assert out.shape == (batch, 1), out.shape
    assert jnp.allclose(out, ref, atol=1e-2, rtol=1e-2), (out, ref)

    # Ragged multi-tile batch (exercises the partial last block + parallel tiles).
    batch2 = 300
    x2 = jax.random.normal(k_x2, (batch2, input_dim), jnp.float32)
    out2 = jax.block_until_ready(value_network_forward(x2, params))
    ref2 = value_network_ref(x2, params, act_dtype=act_dtype)
    assert out2.shape == (batch2, 1), out2.shape
    assert jnp.allclose(out2, ref2, atol=1e-2, rtol=1e-2), (out2, ref2)

    print("KERNEL_OK")
</pallas_src>

<mosaic_0001>
module attributes {stable_mosaic.version = 11 : i64} {
  func.func @value_net_kernel(%arg0: i32, %arg1: memref<8x32xf32, #tpu.memory_space<vmem>>, %arg2: memref<128x32xbf16, #tpu.memory_space<vmem>>, %arg3: memref<128x128xbf16, #tpu.memory_space<vmem>>, %arg4: memref<128x3xf32, #tpu.memory_space<vmem>>, %arg5: memref<1xf32, #tpu.memory_space<smem>>, %arg6: memref<1x8xf32, #tpu.memory_space<vmem>>) attributes {dimension_semantics = [#tpu.dimension_semantics<parallel>], iteration_bounds = array<i64: 1>, scalar_prefetch = 0 : i64, scratch_operands = 0 : i64, tpu.core_type = #tpu.core_type<tc>, window_params = [{transform_indices = @transform_0, window_bounds = array<i64: 8, 32>}, {pipeline_mode = #tpu.pipeline_mode<synchronous>, transform_indices = @transform_1, window_bounds = array<i64: 128, 32>}, {pipeline_mode = #tpu.pipeline_mode<synchronous>, transform_indices = @transform_2, window_bounds = array<i64: 128, 128>}, {pipeline_mode = #tpu.pipeline_mode<synchronous>, transform_indices = @transform_3, window_bounds = array<i64: 128, 3>}, {transform_indices = @transform_4, window_bounds = array<i64: 1>}, {transform_indices = @transform_5, window_bounds = array<i64: 1, 8>}]} {
    %c0 = arith.constant 0 : index
    %c0_0 = arith.constant 0 : index
    %0 = vector.load %arg1[%c0, %c0_0] : memref<8x32xf32, #tpu.memory_space<vmem>>, vector<8x32xf32>
    %1 = arith.truncf %0 : vector<8x32xf32> to vector<8x32xbf16>
    %c0_1 = arith.constant 0 : index
    %c0_2 = arith.constant 0 : index
    %2 = vector.load %arg2[%c0_1, %c0_2] : memref<128x32xbf16, #tpu.memory_space<vmem>>, vector<128x32xbf16>
    %cst = arith.constant dense<0.000000e+00> : vector<128x8xf32>
    %3 = tpu.matmul %2, %1, %cst {dimension_numbers = #tpu.dot_dimension_numbers<[1], [1], [0], [0], [0, 0, 1, 0], [], []>} : vector<128x32xbf16>, vector<8x32xbf16>, vector<128x8xf32> -> vector<128x8xf32>
    %c0_3 = arith.constant 0 : index
    %c0_4 = arith.constant 0 : index
    %4 = vector.load %arg4[%c0_3, %c0_4] : memref<128x3xf32, #tpu.memory_space<vmem>>, vector<128x1xf32>
    %5 = arith.truncf %4 : vector<128x1xf32> to vector<128x1xbf16>
    %6 = arith.truncf %3 : vector<128x8xf32> to vector<128x8xbf16>
    %7 = vector.broadcast %5 : vector<128x1xbf16> to vector<128x8xbf16>
    %8 = arith.addf %6, %7 : vector<128x8xbf16>
    %cst_5 = arith.constant 0.000000e+00 : bf16
    %9 = vector.broadcast %cst_5 : bf16 to vector<128x8xbf16>
    %10 = arith.maximumf %8, %9 : vector<128x8xbf16>
    %c0_6 = arith.constant 0 : index
    %c0_7 = arith.constant 0 : index
    %11 = vector.load %arg3[%c0_6, %c0_7] : memref<128x128xbf16, #tpu.memory_space<vmem>>, vector<128x128xbf16>
    %cst_8 = arith.constant dense<0.000000e+00> : vector<128x8xf32>
    %12 = tpu.matmul %11, %10, %cst_8 {dimension_numbers = #tpu.dot_dimension_numbers<[1], [0], [0], [1], [0, 0, 1, 1], [], []>} : vector<128x128xbf16>, vector<128x8xbf16>, vector<128x8xf32> -> vector<128x8xf32>
    %c0_9 = arith.constant 0 : index
    %c1 = arith.constant 1 : index
    %13 = vector.load %arg4[%c0_9, %c1] : memref<128x3xf32, #tpu.memory_space<vmem>>, vector<128x1xf32>
    %14 = arith.truncf %13 : vector<128x1xf32> to vector<128x1xbf16>
    %15 = arith.truncf %12 : vector<128x8xf32> to vector<128x8xbf16>
    %16 = vector.broadcast %14 : vector<128x1xbf16> to vector<128x8xbf16>
    %17 = arith.addf %15, %16 : vector<128x8xbf16>
    %cst_10 = arith.constant 0.000000e+00 : bf16
    %18 = vector.broadcast %cst_10 : bf16 to vector<128x8xbf16>
    %19 = arith.maximumf %17, %18 : vector<128x8xbf16>
    %c0_11 = arith.constant 0 : index
    %c2 = arith.constant 2 : index
    %20 = vector.load %arg4[%c0_11, %c2] : memref<128x3xf32, #tpu.memory_space<vmem>>, vector<128x1xf32>
    %21 = arith.extf %19 : vector<128x8xbf16> to vector<128x8xf32>
    %22 = vector.broadcast %20 : vector<128x1xf32> to vector<128x8xf32>
    %23 = arith.mulf %21, %22 : vector<128x8xf32>
    %cst_12 = arith.constant dense<0.000000e+00> : vector<8xf32>
    %24 = vector.multi_reduction <add>, %23, %cst_12 [0] : vector<128x8xf32> to vector<8xf32>
    %25 = vector.shape_cast %24 : vector<8xf32> to vector<1x8xf32>
    %c0_13 = arith.constant 0 : index
    %26 = memref.load %arg5[%c0_13] : memref<1xf32, #tpu.memory_space<smem>>
    %27 = vector.broadcast %26 : f32 to vector<1x8xf32>
    %28 = arith.addf %25, %27 : vector<1x8xf32>
    %c0_14 = arith.constant 0 : index
    %c0_15 = arith.constant 0 : index
    %29 = vector.load %arg6[%c0_14, %c0_15] : memref<1x8xf32, #tpu.memory_space<vmem>>, vector<1x8xf32>
    tpu.vector_store %arg6[%c0_14, %c0_15], %28 {strides = array<i32>} : memref<1x8xf32, #tpu.memory_space<vmem>>, vector<1x8xf32>,
    return
  }
  func.func @transform_0(%arg0: i32) -> (i32, i32) {
    %c0_i32 = arith.constant 0 : i32
    %c0_i32_0 = arith.constant 0 : i32
    return %arg0, %c0_i32 : i32, i32
  }
  func.func @transform_1(%arg0: i32) -> (i32, i32) {
    %c0_i32 = arith.constant 0 : i32
    %c0_i32_0 = arith.constant 0 : i32
    %c0_i32_1 = arith.constant 0 : i32
    return %c0_i32, %c0_i32_0 : i32, i32
  }
  func.func @transform_2(%arg0: i32) -> (i32, i32) {
    %c0_i32 = arith.constant 0 : i32
    %c0_i32_0 = arith.constant 0 : i32
    %c0_i32_1 = arith.constant 0 : i32
    return %c0_i32, %c0_i32_0 : i32, i32
  }
  func.func @transform_3(%arg0: i32) -> (i32, i32) {
    %c0_i32 = arith.constant 0 : i32
    %c0_i32_0 = arith.constant 0 : i32
    %c0_i32_1 = arith.constant 0 : i32
    return %c0_i32, %c0_i32_0 : i32, i32
  }
  func.func @transform_4(%arg0: i32) -> i32 {
    %c0_i32 = arith.constant 0 : i32
    %c0_i32_0 = arith.constant 0 : i32
    return %c0_i32 : i32
  }
  func.func @transform_5(%arg0: i32) -> (i32, i32) {
    %c0_i32 = arith.constant 0 : i32
    %c0_i32_0 = arith.constant 0 : i32
    return %c0_i32, %arg0 : i32, i32
  }
}

</mosaic_0001>

<bundles_post_ra>
// kernel: tpu_custom_call.1
= control target key start
LH: loop header
LB: loop body
LE: loop exit
PB: predicated region body
PF: predicated region fallthrough
CT: control target
= control target key end

     0   :  { %vm81_vm0 = vcmask 261120   ;;  %v1131_v2 = vmov 0   ;;  %s1560_s0 = inlined_call_operand.vmem [shape: f32[8,32], index: 0, kind: input, shape index: {}]   ;;  %s1561_s1 = inlined_call_operand.vmem [shape: bf16[128,32], index: 1, kind: input, shape index: {}]   ;;  %s1562_s2 = inlined_call_operand.vmem [shape: bf16[128,128], index: 2, kind: input, shape index: {}]   ;;  %s1563_s3 = inlined_call_operand.vmem [shape: f32[128,3], index: 3, kind: input, shape index: {}]   ;;  %s1564_s4 = inlined_call_operand.<no memory space> [shape: f32[1], index: 4, kind: input, shape index: {}]   ;;  %s1565_s5 = inlined_call_operand.hbm [shape: f32[1,8], index: 5, kind: output, shape index: {}]  }
   0x1   :  { %v1169_v0 = vld [vmem:[%s1563_s3 + $0x70] sm:$0xff]  ;;  %v23_v1 = vld [vmem:[%s1560_s0] sm:$0xff]  ;;  %1096 = vset.pattern.permute.xlu0 %v1131_v2  ;;  %1098 = vset.pattern.permute.xlu2 %v1131_v2  ;;  %v1201_v10 = vld [vmem:[%s1563_s3 + $0x78] sm:$0xff] }
   0x2   :  { %v1176_v3 = vpack.c.bf16 %v1169_v0, %v1169_v0  ;;  %v24_v4 = vpack.c.bf16 %v23_v1, %v23_v1  ;;  %v1181_v5 = vld [vmem:[%s1563_s3 + $0x60] sm:$0xff]  ;;  %1097 = vset.pattern.permute.xlu1 %v1131_v2  ;;  %v1190_v7 = vld [vmem:[%s1563_s3 + $0x50] sm:$0xff]  ;;  %1567 = vst [vmem:[#allocation6_spill] sm:$0xff] %v1201_v10  ;;  %v1208_v11 = vld [vmem:[%s1563_s3 + $0x68] sm:$0xff] }
   0x3   :  { %v1185_v6 = vpack.c.bf16 %v1181_v5, %v1181_v5  ;;  %v1196_v9 = vpack.c.bf16 %v1190_v7, %v1190_v7  ;;  %v1213_v12 = vld [vmem:[%s1563_s3 + $0x58] sm:$0xff] }
   0x4   :  { %334 = vperm.xlu0 %1096, %v1176_v3   ;;  %v107_v8 = vsel %vm81_vm0, %v24_v4, 0 }
   0x5   :  { %116 = vmatpush.bf16.xpose.msra.mxu0 %v107_v8  ;;  %1082 = vmatpush.bf16.xpose.msra.mxu3 %v107_v8 }
   0x6   :  { %316 = vperm.xlu1 %1097, %v1185_v6   ;;  %298 = vperm.xlu2 %1098, %v1196_v9  }
   0x7   :  { %11 = vsyncpa [#allocation4], 0  ;;  %v1217_v13 = vpack.c.bf16 %v1201_v10, %v1201_v10  ;;  %v1066_v14 = vld [vmem:[%s1561_s1] sm:$0xff]  ;;  %v1071_v15 = vld [vmem:[%s1561_s1 + $0x28] sm:$0xff]  ;;  %v1227_v16 = vpack.c.bf16 %v1208_v11, %v1208_v11  ;;  %v1231_v17 = vpack.c.bf16 %v1213_v12, %v1213_v12  ;;  %v1132_v54 = vmov 839922192  }
   0x8   :  { %v1239_v18 = vld [vmem:[%s1563_s3 + $0x40] sm:$0xff]  ;;  %v1246_v19 = vld [vmem:[%s1563_s3 + $0x48] sm:$0xff]  ;;  %v1251_v20 = vld [vmem:[%s1563_s3 + $0x30] sm:$0xff]  ;;  %v212_v55 = vunpack.c.l.s4 %v1132_v54  ;;  %vm935_vm1 = vcmask 64512   ;;  %s1135_s30 = smov [#allocation3]   ;;  %s985_s9 = sshll.u32 %s1565_s5, 4  ;;  %s986_s9 = int_to_ptr.hbm [resolvable:$true] %s985_s9 }
   0x9   :  { %v1255_v21 = vpack.c.bf16 %v1239_v18, %v1239_v18  ;;  %v1259_v22 = vpack.c.bf16 %v1246_v19, %v1246_v19  ;;  %v1263_v23 = vpack.c.bf16 %v1251_v20, %v1251_v20  ;;  %v1269_v24 = vld [vmem:[%s1563_s3 + $0x38] sm:$0xff]  ;;  %v1276_v25 = vld [vmem:[%s1563_s3 + $0x28] sm:$0xff]  ;;  %v1281_v26 = vld [vmem:[%s1563_s3 + $0x20] sm:$0xff]  ;;  %s983_s6 = sshll.u32 %s1135_s30, 4  ;;  %vm976_vm2 = vcmask 57344   ;;  %s984_s6 = int_to_ptr.vmem [resolvable:$true] %s983_s6 }
   0xa   :  { %v1285_v27 = vpack.c.bf16 %v1269_v24, %v1269_v24  ;;  %v1067_v28 = vld [vmem:[%s1561_s1 + $0x8] sm:$0xff]  ;;  %v1072_v29 = vld [vmem:[%s1561_s1 + $0x30] sm:$0xff]  ;;  %v1295_v30 = vpack.c.bf16 %v1276_v25, %v1276_v25  ;;  %v1299_v31 = vpack.c.bf16 %v1281_v26, %v1281_v26  ;;  %v1314_v33 = vld [vmem:[%s1563_s3 + $0x18] sm:$0xff]  ;;  %v1367_v57 = vunpack.c.0.s8 %v212_v55 }
   0xb   :  { %v1307_v32 = vld [vmem:[%s1563_s3 + $0x10] sm:$0xff]  ;;  %v1319_v34 = vld [vmem:[%s1563_s3] sm:$0xff]  ;;  %v1325_v36 = vpack.c.bf16 %v1314_v33, %v1314_v33  ;;  %v1332_v38 = vld [vmem:[%s1563_s3 + $0x8] sm:$0xff] }
   0xc   :  { %343 = vperm.xlu0 %1096, %v1217_v13   ;;  %1026 = vmatmul.msk.bf16.vlgmr.msra.gmra.mxu0 %vm81_vm0, %v1066_v14  ;;  %v176_v35 = vpack.c.bf16 %v1307_v32, %v1307_v32  ;;  %v174_v37 = vpack.c.bf16 %v1319_v34, %v1319_v34  ;;  %v175_v39 = vpack.c.bf16 %v1332_v38, %v1332_v38  ;;  %v1068_v40 = vld [vmem:[%s1561_s1 + $0x10] sm:$0xff]  ;;  %v1073_v41 = vld [vmem:[%s1561_s1 + $0x38] sm:$0xff]  ;;  %v1070_v43 = vld [vmem:[%s1561_s1 + $0x20] sm:$0xff] }
   0xd   :  { %1031 = vmatmul.msk.bf16.vlgmr.msra.gmra.mxu3 %vm81_vm0, %v1071_v15  ;;  %v1069_v42 = vld [vmem:[%s1561_s1 + $0x18] sm:$0xff] }
   0xe   :  { %325 = vperm.xlu1 %1097, %v1227_v16   ;;  %307 = vperm.xlu2 %1098, %v1231_v17  }
  0x14   :  { %280 = vperm.xlu0 %1096, %v1255_v21  }
  0x16   :  { %289 = vperm.xlu1 %1097, %v1259_v22   ;;  %262 = vperm.xlu2 %1098, %v1263_v23  }
  0x1c   :  { %271 = vperm.xlu0 %1096, %v1285_v27   ;;  %1027 = vmatmul.msk.bf16.gmra.mxu0 %vm81_vm0, %v1067_v28 }
  0x1d   :  { %1032 = vmatmul.msk.bf16.gmra.mxu3 %vm81_vm0, %v1072_v29 }
  0x1e   :  { %253 = vperm.xlu2 %1098, %v1295_v30   ;;  %244 = vperm.xlu1 %1097, %v1299_v31  }
  0x24   :  { %226 = vperm.xlu0 %1096, %v176_v35  }
  0x26   :  { %235 = vperm.xlu1 %1097, %v1325_v36   ;;  %208 = vperm.xlu2 %1098, %v174_v37  }
  0x2c   :  { %217 = vperm.xlu0 %1096, %v175_v39   ;;  %1028 = vmatmul.msk.bf16.gmra.mxu0 %vm81_vm0, %v1068_v40 }
  0x2d   :  { %1033 = vmatmul.msk.bf16.gmra.mxu3 %vm81_vm0, %v1073_v41 }
  0x3c   :  { %1029 = vmatmul.msk.bf16.gmra.mxu0 %vm81_vm0, %v1069_v42 }
  0x4c   :  { %1030 = vmatmul.msk.bf16.gmra.mxu0 %vm81_vm0, %v1070_v43 }
  0x60   :  { %v1353_v44 = vpop.permute.xlu2 %298 }
  0x68   :  { %v1355_v46 = vpop.permute.xlu2 %307 }
  0x70   :  { %v1357_v48 = vpop.permute.xlu2 %262 }
  0x76   :  { %v335_v45 = vpop.permute.xlu0 %334 }
  0x78   :  { %v1361_v51 = vpop.permute.xlu2 %253 }
  0x7e   :  { %v344_v47 = vpop.permute.xlu0 %343 }
  0x80   :  { %v209_v58 = vpop.permute.xlu2 %208 }
  0x81   :  { %v214_v61 = vperm.slane %v209_v58, %v1367_v57  ;;  %v317_v58 = vpop.permute.xlu1 %316 }
  0x83   :  { %v366_v1 = vunpack.c.l.bf16 %v214_v61  ;;  %v1133_v61 = vmov 1  }
  0x84   :  { %1099 = vset.pattern.permute.xlu1 %v1133_v61  ;;  %1101 = vset.pattern.permute.xlu0 %v1133_v61 }
  0x85   :  { %584 = vperm.xlu1 %1099, %v174_v37   ;;  %600 = vperm.xlu0 %1101, %v176_v35  }
  0x86   :  { %v1359_v49 = vpop.permute.xlu0 %280  ;;  %1100 = vset.pattern.permute.xlu2 %v1133_v61 }
  0x87   :  { %592 = vperm.xlu2 %1100, %v175_v39  }
  0x89   :  { %v118_v50 = vpop.f32.mrf.mxu0 }
  0x8a   :  { %v190_v62 = vpack.c.bf16 %v118_v50, %v118_v50 }
  0x8c   :  { %v350_v2 = vunpack.c.l.bf16 %v190_v62  ;;  %v340_v62 = vperm.slane %v335_v45, %v1367_v57  ;;  %v304_v45 = vperm.slane %v1353_v44, %v1367_v57 }
  0x8d   :  { %608 = vperm.xlu1 %1099, %v1325_v36   ;;  %640 = vperm.xlu0 %1101, %v1285_v27  }
  0x8e   :  { %v1363_v52 = vpop.permute.xlu0 %271  ;;  %v382_v28 = vadd.f32 %v366_v1, %v350_v2  ;;  %v380_v35 = vunpack.c.l.bf16 %v340_v62  ;;  %v376_v62 = vunpack.c.l.bf16 %v304_v45 }
  0x8f   :  { %616 = vperm.xlu2 %1100, %v1299_v31  }
  0x90   :  { %v1365_v53 = vpop.f32.mrf.mxu3  ;;  %v430_v43 = vmax.f32 %v382_v28, 0.0 }
  0x91   :  { %v120_v56 = vpop.f32.mrf.mxu0  ;;  %v200_v36 = vpack.c.bf16 %v1365_v53, %v1365_v53 }
  0x92   :  { %v191_v4 = vpack.c.bf16 %v120_v56, %v120_v56 }
  0x93   :  { %v360_v44 = vunpack.c.l.bf16 %v200_v36 }
  0x94   :  { %v351_v29 = vunpack.c.l.bf16 %v191_v4  ;;  %v322_v4 = vperm.slane %v317_v58, %v1367_v57 }
  0x95   :  { %624 = vperm.xlu1 %1099, %v1295_v30   ;;  %664 = vperm.xlu0 %1101, %v1196_v9  }
  0x96   :  { %v1369_v59 = vpop.permute.xlu0 %226 }
  0x97   :  { %632 = vperm.xlu2 %1100, %v1263_v23  }
  0x98   :  { %v145_v60 = vpop.f32.mrf.mxu3 }
  0x99   :  { %v1372_v63 = vpop.f32.mrf.mxu0 }
  0x9d   :  { %648 = vperm.xlu1 %1099, %v1255_v21   ;;  %688 = vperm.xlu0 %1101, %v1227_v16   ;;  %v286_v21 = vperm.slane %v1359_v49, %v1367_v57  ;;  %v268_v16 = vperm.slane %v1357_v48, %v1367_v57 }
  0x9e   :  { %v218_v8 = vpop.permute.xlu0 %217 }
  0x9f   :  { %v223_v14 = vperm.slane %v218_v8, %v1367_v57  ;;  %v326_v8 = vpop.permute.xlu1 %325  ;;  %656 = vperm.xlu2 %1100, %v1259_v22   ;;  %v277_v22 = vperm.slane %v1363_v52, %v1367_v57  ;;  %v374_v49 = vunpack.c.l.bf16 %v286_v21  ;;  %v372_v52 = vunpack.c.l.bf16 %v268_v16 }
  0xa0   :  { %v148_v15 = vpop.f32.mrf.mxu3  ;;  %v331_v28 = vperm.slane %v326_v8, %v1367_v57 }
  0xa1   :  { %v367_v40 = vunpack.c.l.bf16 %v223_v14  ;;  %v1375_v41 = vpop.f32.mrf.mxu0  ;;  %v349_v14 = vperm.slane %v344_v47, %v1367_v57  ;;  %v202_v37 = vpack.c.bf16 %v148_v15, %v148_v15 }
  0xa3   :  { %v383_v42 = vadd.f32 %v367_v40, %v351_v29  ;;  %v313_v40 = vperm.slane %v1355_v46, %v1367_v57  ;;  %v381_v47 = vunpack.c.l.bf16 %v349_v14  ;;  %v362_v58 = vunpack.c.l.bf16 %v202_v37 }
  0xa5   :  { %v431_v54 = vmax.f32 %v383_v42, 0.0  ;;  %v378_v42 = vunpack.c.l.bf16 %v322_v4  ;;  %672 = vperm.xlu1 %1099, %v1231_v17   ;;  %v259_v17 = vperm.slane %v1361_v51, %v1367_v57 }
  0xa7   :  { %v1377_v55 = vpack.c.bf16 %v431_v54, %v430_v43  ;;  %v379_v43 = vunpack.c.l.bf16 %v331_v28  ;;  %v201_v54 = vpack.c.bf16 %v145_v60, %v145_v60  ;;  %v394_v46 = vadd.f32 %v378_v42, %v362_v58  ;;  %v290_v60 = vpop.permute.xlu1 %289  ;;  %680 = vperm.xlu2 %1100, %v1185_v6  }
  0xa8   :  { %v150_v50 = vpop.f32.mrf.mxu3 }
  0xa9   :  { %v1379_v10 = vpop.f32.mrf.mxu0  ;;  %v203_v39 = vpack.c.bf16 %v150_v50, %v150_v50  ;;  %v361_v8 = vunpack.c.l.bf16 %v201_v54  ;;  %v442_v45 = vmax.f32 %v394_v46, 0.0 }
  0xab   :  { %v363_v15 = vunpack.c.l.bf16 %v203_v39 }
  0xad   :  { %v395_v4 = vadd.f32 %v379_v43, %v363_v15  ;;  %696 = vperm.xlu1 %1099, %v1176_v3  }
  0xaf   :  { %v245_v23 = vpop.permute.xlu1 %244  ;;  %704 = vperm.xlu2 %1100, %v1217_v13  }
  0xb0   :  { %v153_v56 = vpop.f32.mrf.mxu3 }
  0xb1   :  { %v204_v1 = vpack.c.bf16 %v153_v56, %v153_v56  ;;  %v1382_v2 = vpop.f32.mrf.mxu0 }
  0xb2   :  { %v195_v48 = vpack.c.bf16 %v1382_v2, %v1382_v2  ;;  %v193_v2 = vpack.c.bf16 %v1375_v41, %v1375_v41 }
  0xb3   :  { %v364_v29 = vunpack.c.l.bf16 %v204_v1  ;;  %v377_v1 = vunpack.c.l.bf16 %v313_v40  ;;  %v443_v40 = vmax.f32 %v395_v4, 0.0 }
  0xb4   :  { %v353_v41 = vunpack.c.l.bf16 %v193_v2 }
  0xb5   :  { %v396_v50 = vadd.f32 %v380_v35, %v364_v29  ;;  %v392_v35 = vadd.f32 %v376_v62, %v360_v44  ;;  %v393_v37 = vadd.f32 %v377_v1, %v361_v8  ;;  %v452_v9 = vpack.c.bf16 %v443_v40, %v442_v45 }
  0xb6   :  { %v373_v1 = vunpack.c.l.bf16 %v277_v22  ;;  %v194_v8 = vpack.c.bf16 %v1379_v10, %v1379_v10 }
  0xb7   :  { %v444_v53 = vmax.f32 %v396_v50, 0.0  ;;  %v440_v30 = vmax.f32 %v392_v35, 0.0  ;;  %v441_v42 = vmax.f32 %v393_v37, 0.0  ;;  %v1134_v50 = vmov 2   ;;  %v236_v6 = vpop.permute.xlu1 %235 }
  0xb8   :  { %v155_v27 = vpop.f32.mrf.mxu3  ;;  %1102 = vset.pattern.permute.xlu0 %v1134_v50  ;;  %v232_v35 = vperm.slane %v1369_v59, %v1367_v57  ;;  %v192_v37 = vpack.c.bf16 %v1372_v63, %v1372_v63  ;;  %1103 = vset.pattern.permute.xlu1 %v1134_v50 }
  0xb9   :  { %v205_v61 = vpack.c.bf16 %v155_v27, %v155_v27  ;;  %v133_v56 = vpop.f32.mrf.mxu0  ;;  %v451_v43 = vpack.c.bf16 %v441_v42, %v440_v30  ;;  %v295_v27 = vperm.slane %v290_v60, %v1367_v57  ;;  %841 = vperm.xlu0 %1102, %v1319_v34   ;;  %v371_v34 = vunpack.c.l.bf16 %v259_v17  ;;  %846 = vperm.xlu1 %1103, %v1332_v38  }
  0xba   :  { %v196_v58 = vpack.c.bf16 %v133_v56, %v133_v56  ;;  %v250_v56 = vperm.slane %v245_v23, %v1367_v57  ;;  %v368_v23 = vunpack.c.l.bf16 %v232_v35  ;;  %v352_v13 = vunpack.c.l.bf16 %v192_v37  ;;  %1104 = vset.pattern.permute.xlu2 %v1134_v50 }
  0xbb   :  { %v365_v31 = vunpack.c.l.bf16 %v205_v61  ;;  %v375_v44 = vunpack.c.l.bf16 %v295_v27  ;;  %851 = vperm.xlu2 %1104, %v1307_v32   ;;  %v1074_v32 = vld [vmem:[%s1562_s2] sm:$0xff] }
  0xbc   :  { %v356_v46 = vunpack.c.l.bf16 %v196_v58  ;;  %v370_v10 = vunpack.c.l.bf16 %v250_v56 }
  0xbd   :  { %v397_v14 = vadd.f32 %v381_v47, %v365_v31 }
  0xbe   :  { %v388_v3 = vadd.f32 %v372_v52, %v356_v46 }
  0xbf   :  { %v445_v28 = vmax.f32 %v397_v14, 0.0  ;;  %v241_v14 = vperm.slane %v236_v6, %v1367_v57 }
  0xc0   :  { %v436_v59 = vmax.f32 %v388_v3, 0.0 }
  0xc1   :  { %v135_v39 = vpop.f32.mrf.mxu0  ;;  %v453_v29 = vpack.c.bf16 %v445_v28, %v444_v53  ;;  %v355_v53 = vunpack.c.l.bf16 %v195_v48  ;;  %v369_v40 = vunpack.c.l.bf16 %v241_v14  ;;  %866 = vperm.xlu0 %1102, %v1276_v25   ;;  %v384_v25 = vadd.f32 %v368_v23, %v352_v13  ;;  %856 = vperm.xlu1 %1103, %v1314_v33  }
  0xc2   :  { %v197_v54 = vpack.c.bf16 %v135_v39, %v135_v39  ;;  %v354_v39 = vunpack.c.l.bf16 %v194_v8 }
  0xc3   :  { %518 = vmatpush.bf16.msra.mxu1 %v453_v29  ;;  %1083 = vmatpush.bf16.msra.mxu2 %v453_v29  ;;  %v432_v22 = vmax.f32 %v384_v25, 0.0 }
  0xc4   :  { %v357_v31 = vunpack.c.l.bf16 %v197_v54  ;;  %861 = vperm.xlu2 %1104, %v1281_v26   ;;  %v1079_v26 = vld [vmem:[%s1562_s2 + $0x28] sm:$0xff] }
  0xc6   :  { %v389_v60 = vadd.f32 %v373_v1, %v357_v31 }
  0xc7   :  { %519 = vmatpush.bf16.msra.mxu1 %v452_v9  ;;  %1084 = vmatpush.bf16.msra.mxu2 %v452_v9  ;;  %v387_v9 = vadd.f32 %v371_v34, %v355_v53 }
  0xc8   :  { %v437_v42 = vmax.f32 %v389_v60, 0.0 }
  0xc9   :  { %v138_v47 = vpop.f32.mrf.mxu0  ;;  %881 = vperm.xlu0 %1102, %v1239_v18   ;;  %v1078_v18 = vld [vmem:[%s1562_s2 + $0x20] sm:$0xff]  ;;  %871 = vperm.xlu1 %1103, %v1251_v20  }
  0xca   :  { %v198_v36 = vpack.c.bf16 %v138_v47, %v138_v47  ;;  %v386_v47 = vadd.f32 %v370_v10, %v354_v39  ;;  %v449_v63 = vpack.c.bf16 %v437_v42, %v436_v59  ;;  %v1568_v20 = vld [vmem:[#allocation6_spill] sm:$0xff] }
  0xcb   :  { %520 = vmatpush.bf16.msra.mxu1 %v451_v43  ;;  %1085 = vmatpush.bf16.msra.mxu2 %v451_v43  ;;  %v385_v43 = vadd.f32 %v369_v40, %v353_v41 }
  0xcc   :  { %v358_v15 = vunpack.c.l.bf16 %v198_v36  ;;  %v435_v36 = vmax.f32 %v387_v9, 0.0  ;;  %v434_v21 = vmax.f32 %v386_v47, 0.0  ;;  %876 = vperm.xlu2 %1104, %v1269_v24  }
  0xcd   :  { %v433_v16 = vmax.f32 %v385_v43, 0.0 }
  0xce   :  { %v390_v51 = vadd.f32 %v374_v49, %v358_v15  ;;  %v448_v54 = vpack.c.bf16 %v435_v36, %v434_v21 }
  0xcf   :  { %v447_v27 = vpack.c.bf16 %v433_v16, %v432_v22 }
  0xd0   :  { %v438_v45 = vmax.f32 %v390_v51, 0.0 }
  0xd1   :  { %v140_v61 = vpop.f32.mrf.mxu0  ;;  %896 = vperm.xlu0 %1102, %v1213_v12   ;;  %886 = vperm.xlu1 %1103, %v1246_v19   ;;  %v1075_v12 = vld [vmem:[%s1562_s2 + $0x8] sm:$0xff] }
  0xd2   :  { %v199_v62 = vpack.c.bf16 %v140_v61, %v140_v61 }
  0xd4   :  { %v359_v4 = vunpack.c.l.bf16 %v199_v62  ;;  %891 = vperm.xlu2 %1104, %v1190_v7   ;;  %v1080_v7 = vld [vmem:[%s1562_s2 + $0x30] sm:$0xff] }
  0xd6   :  { %v391_v28 = vadd.f32 %v375_v44, %v359_v4 }
  0xd8   :  { %v439_v29 = vmax.f32 %v391_v28, 0.0 }
  0xd9   :  { %911 = vperm.xlu0 %1102, %v1169_v0   ;;  %901 = vperm.xlu1 %1103, %v1181_v5   ;;  %v1076_v0 = vld [vmem:[%s1562_s2 + $0x10] sm:$0xff]  ;;  %v1077_v5 = vld [vmem:[%s1562_s2 + $0x18] sm:$0xff] }
  0xda   :  { %v450_v30 = vpack.c.bf16 %v439_v29, %v438_v45 }
  0xdc   :  { %521 = vmatpush.bf16.msra.mxu1 %v450_v30  ;;  %1086 = vmatpush.bf16.msra.mxu2 %v450_v30 }
  0xdd   :  { %906 = vperm.xlu2 %1104, %v1208_v11   ;;  %v1081_v11 = vld [vmem:[%s1562_s2 + $0x38] sm:$0xff] }
  0xe0   :  { %522 = vmatpush.bf16.msra.mxu1 %v449_v63  ;;  %1087 = vmatpush.bf16.msra.mxu2 %v449_v63 }
  0xe1   :  { %916 = vperm.xlu1 %1103, %v1568_v20   ;;  %v593_v24 = vpop.permute.xlu2 %592 }
  0xe2   :  { %v598_v4 = vperm.slane %v593_v24, %v1367_v57 }
  0xe4   :  { %523 = vmatpush.bf16.msra.mxu1 %v448_v54  ;;  %1088 = vmatpush.bf16.msra.mxu2 %v448_v54  ;;  %v728_v3 = vunpack.c.l.bf16 %v598_v4 }
  0xe8   :  { %524 = vmatpush.bf16.msra.mxu1 %v447_v27  ;;  %1089 = vmatpush.bf16.msra.mxu2 %v447_v27 }
  0xe9   :  { %v617_v38 = vpop.permute.xlu2 %616 }
  0xea   :  { %v622_v23 = vperm.slane %v617_v38, %v1367_v57 }
  0xec   :  { %525 = vmatpush.bf16.msra.mxu1 %v1377_v55  ;;  %1090 = vmatpush.bf16.msra.mxu2 %v1377_v55  ;;  %v731_v16 = vunpack.c.l.bf16 %v622_v23 }
  0xef   :  { %526 = vmatmul.bf16.vlgmr.msra.gmra.mxu1 %v1074_v32  ;;  %546 = vmatmul.bf16.vlgmr.msra.gmra.mxu2 %v1078_v18 }
  0xf1   :  { %v633_v15 = vpop.permute.xlu2 %632 }
  0xf2   :  { %v638_v59 = vperm.slane %v633_v15, %v1367_v57 }
  0xf7   :  { %v585_v19 = vpop.permute.xlu1 %584  ;;  %v601_v50 = vpop.permute.xlu0 %600 }
  0xf8   :  { %v606_v2 = vperm.slane %v601_v50, %v1367_v57  ;;  %v590_v28 = vperm.slane %v585_v19, %v1367_v57 }
  0xf9   :  { %v657_v6 = vpop.permute.xlu2 %656 }
  0xfa   :  { %v729_v9 = vunpack.c.l.bf16 %v606_v2  ;;  %v727_v42 = vunpack.c.l.bf16 %v590_v28  ;;  %v662_v22 = vperm.slane %v657_v6, %v1367_v57 }
  0xff   :  { %531 = vmatmul.bf16.gmra.mxu1 %v1075_v12  ;;  %551 = vmatmul.bf16.gmra.mxu2 %v1079_v26  ;;  %v609_v33 = vpop.permute.xlu1 %608  ;;  %v1473_v48 = vpop.permute.xlu0 %640  ;;  %v733_v26 = vunpack.c.l.bf16 %v638_v59 }
 0x100   :  { %v614_v29 = vperm.slane %v609_v33, %v1367_v57  ;;  %v646_v20 = vperm.slane %v1473_v48, %v1367_v57 }
 0x101   :  { %v681_v1 = vpop.permute.xlu2 %680 }
 0x102   :  { %v730_v43 = vunpack.c.l.bf16 %v614_v29 }
 0x107   :  { %v625_v55 = vpop.permute.xlu1 %624  ;;  %v665_v44 = vpop.permute.xlu0 %664 }
 0x108   :  { %v630_v63 = vperm.slane %v625_v55, %v1367_v57 }
 0x109   :  { %v705_v53 = vpop.permute.xlu2 %704 }
 0x10a   :  { %v710_v38 = vperm.slane %v705_v53, %v1367_v57 }
 0x10f   :  { %536 = vmatmul.bf16.gmra.mxu1 %v1076_v0  ;;  %556 = vmatmul.bf16.gmra.mxu2 %v1080_v7  ;;  %v1469_v17 = vpop.permute.xlu1 %648  ;;  %v1488_v35 = vpop.permute.xlu0 %688  ;;  %v686_v0 = vperm.slane %v681_v1, %v1367_v57  ;;  %v1510_v1 = vunpack.c.l.bf16 %v646_v20 }
 0x110   :  { %v654_v50 = vperm.slane %v1469_v17, %v1367_v57 }
 0x115   :  { %v1499_v32 = vpop.permute.xlu2 %851 }
 0x117   :  { %v1475_v31 = vpop.permute.xlu1 %672 }
 0x118   :  { %v678_v17 = vperm.slane %v1475_v31, %v1367_v57 }
 0x11f   :  { %541 = vmatmul.bf16.gmra.mxu1 %v1077_v5  ;;  %561 = vmatmul.bf16.gmra.mxu2 %v1081_v11  ;;  %v1481_v8 = vpop.permute.xlu1 %696  ;;  %v732_v5 = vunpack.c.l.bf16 %v630_v63  ;;  %v670_v11 = vperm.slane %v665_v44, %v1367_v57  ;;  %v1512_v44 = vunpack.c.l.bf16 %v686_v0 }
 0x121   :  { %v737_v4 = vunpack.c.l.bf16 %v670_v11 }
 0x12b   :  { %v1491_v40 = vpop.permute.xlu1 %846  ;;  %v842_v19 = vpop.permute.xlu0 %841 }
 0x133   :  { %v857_v48 = vpop.permute.xlu1 %856 }
 0x16c   :  { %v527_v58 = vpop.f32.mrf.mxu1 }
 0x16d   :  { %v567_v34 = vpack.c.bf16 %v527_v58, %v527_v58 }
 0x16f   :  { %v711_v45 = vunpack.c.l.bf16 %v567_v34 }
 0x171   :  { %v743_v36 = vadd.f32 %v727_v42, %v711_v45  ;;  %v862_v42 = vpop.permute.xlu2 %861 }
 0x172   :  { %v1471_v61 = vpop.f32.mrf.mxu2 }
 0x173   :  { %v791_v24 = vmax.f32 %v743_v36, 0.0  ;;  %v575_v55 = vpack.c.bf16 %v1471_v61, %v1471_v61  ;;  %v867_v36 = vpop.permute.xlu0 %866 }
 0x174   :  { %v529_v49 = vpop.f32.mrf.mxu1 }
 0x175   :  { %v568_v51 = vpack.c.bf16 %v529_v49, %v529_v49  ;;  %v736_v49 = vunpack.c.l.bf16 %v662_v22  ;;  %v807_v34 = vpack.c.bf16 %v791_v24, %v791_v24  ;;  %v719_v28 = vunpack.c.l.bf16 %v575_v55 }
 0x177   :  { %v712_v10 = vunpack.c.l.bf16 %v568_v51 }
 0x179   :  { %v744_v13 = vadd.f32 %v728_v3, %v712_v10 }
 0x17a   :  { %v1477_v62 = vpop.f32.mrf.mxu2 }
 0x17b   :  { %v792_v27 = vmax.f32 %v744_v13, 0.0  ;;  %v576_v61 = vpack.c.bf16 %v1477_v62, %v1477_v62  ;;  %v702_v62 = vperm.slane %v1481_v8, %v1367_v57 }
 0x17c   :  { %v532_v52 = vpop.f32.mrf.mxu1 }
 0x17d   :  { %v569_v60 = vpack.c.bf16 %v532_v52, %v532_v52  ;;  %v808_v6 = vpack.c.bf16 %v792_v27, %v792_v27  ;;  %v720_v31 = vunpack.c.l.bf16 %v576_v61  ;;  %v741_v8 = vunpack.c.l.bf16 %v702_v62 }
 0x17f   :  { %v713_v30 = vunpack.c.l.bf16 %v569_v60  ;;  %v1520_v60 = vunpack.c.l.bf16 %v710_v38 }
 0x181   :  { %v745_v54 = vadd.f32 %v729_v9, %v713_v30  ;;  %v823_v30 = vunpack.c.l.bf16 %v807_v34 }
 0x182   :  { %v1479_v56 = vpop.f32.mrf.mxu2 }
 0x183   :  { %v793_v58 = vmax.f32 %v745_v54, 0.0  ;;  %v919_v27 = vmul.f32 %v842_v19, %v823_v30 }
 0x184   :  { %v534_v46 = vpop.f32.mrf.mxu1 }
 0x185   :  { %v570_v37 = vpack.c.bf16 %v534_v46, %v534_v46  ;;  %v694_v46 = vperm.slane %v1488_v35, %v1367_v57  ;;  %v809_v10 = vpack.c.bf16 %v793_v58, %v793_v58  ;;  %v577_v35 = vpack.c.bf16 %v1479_v56, %v1479_v56 }
 0x187   :  { %v714_v47 = vunpack.c.l.bf16 %v570_v37  ;;  %v735_v37 = vunpack.c.l.bf16 %v654_v50  ;;  %v1524_v45 = vunpack.c.l.bf16 %v694_v46  ;;  %v936_v50 = vsel %vm935_vm1, %v919_v27, 0.0 }
 0x189   :  { %v746_v18 = vadd.f32 %v730_v43, %v714_v47  ;;  %v738_v47 = vunpack.c.l.bf16 %v678_v17  ;;  %v751_v59 = vadd.f32 %v735_v37, %v719_v28  ;;  %v825_v43 = vunpack.c.l.bf16 %v809_v10 }
 0x18a   :  { %v1484_v14 = vpop.f32.mrf.mxu2 }
 0x18b   :  { %v794_v52 = vmax.f32 %v746_v18, 0.0  ;;  %v578_v23 = vpack.c.bf16 %v1484_v14, %v1484_v14  ;;  %v752_v18 = vadd.f32 %v736_v49, %v720_v31  ;;  %v872_v14 = vpop.permute.xlu1 %871 }
 0x18c   :  { %v537_v39 = vpop.f32.mrf.mxu1 }
 0x18d   :  { %v571_v41 = vpack.c.bf16 %v537_v39, %v537_v39  ;;  %v824_v39 = vunpack.c.l.bf16 %v808_v6  ;;  %v810_v3 = vpack.c.bf16 %v794_v52, %v794_v52  ;;  %v800_v49 = vmax.f32 %v752_v18, 0.0 }
 0x18f   :  { %v715_v25 = vunpack.c.l.bf16 %v571_v41  ;;  %v920_v63 = vmul.f32 %v1491_v40, %v824_v39  ;;  %v826_v54 = vunpack.c.l.bf16 %v810_v3  ;;  %v816_v3 = vpack.c.bf16 %v800_v49, %v800_v49 }
 0x191   :  { %v747_v33 = vadd.f32 %v731_v16, %v715_v25  ;;  %v721_v25 = vunpack.c.l.bf16 %v577_v35  ;;  %v937_v24 = vsel %vm935_vm1, %v920_v63, 0.0  ;;  %v922_v38 = vmul.f32 %v857_v48, %v826_v54  ;;  %v882_v35 = vpop.permute.xlu0 %881 }
 0x192   :  { %v1496_v21 = vpop.f32.mrf.mxu2  ;;  %v938_v61 = vadd.f32 %v937_v24, %v936_v50 }
 0x193   :  { %v795_v2 = vmax.f32 %v747_v33, 0.0  ;;  %v579_v57 = vpack.c.bf16 %v1496_v21, %v1496_v21  ;;  %v753_v33 = vadd.f32 %v737_v4, %v721_v25  ;;  %v877_v4 = vpop.permute.xlu2 %876  ;;  %v941_v17 = vsel %vm935_vm1, %v922_v38, 0.0 }
 0x194   :  { %v539_v12 = vpop.f32.mrf.mxu1 }
 0x195   :  { %v572_v7 = vpack.c.bf16 %v539_v12, %v539_v12  ;;  %v811_v13 = vpack.c.bf16 %v795_v2, %v795_v2  ;;  %v722_v12 = vunpack.c.l.bf16 %v578_v23  ;;  %v723_v21 = vunpack.c.l.bf16 %v579_v57 }
 0x196   :  { %v801_v48 = vmax.f32 %v753_v33, 0.0 }
 0x197   :  { %v716_v15 = vunpack.c.l.bf16 %v572_v7  ;;  %v827_v20 = vunpack.c.l.bf16 %v811_v13  ;;  %v921_v7 = vmul.f32 %v1499_v32, %v825_v43  ;;  %v754_v6 = vadd.f32 %v738_v47, %v722_v12  ;;  %v887_v13 = vpop.permute.xlu1 %886 }
 0x198   :  { %v817_v47 = vpack.c.bf16 %v801_v48, %v801_v48 }
 0x199   :  { %v748_v51 = vadd.f32 %v732_v5, %v716_v15  ;;  %v799_v5 = vmax.f32 %v751_v59, 0.0  ;;  %v923_v52 = vmul.f32 %v862_v42, %v827_v20  ;;  %v939_v32 = vsel %vm935_vm1, %v921_v7, 0.0 }
 0x19a   :  { %v559_v53 = vpop.f32.mrf.mxu2  ;;  %v940_v39 = vadd.f32 %v939_v32, %v938_v61  ;;  %v802_v62 = vmax.f32 %v754_v6, 0.0 }
 0x19b   :  { %v796_v41 = vmax.f32 %v748_v51, 0.0  ;;  %v580_v40 = vpack.c.bf16 %v559_v53, %v559_v53  ;;  %v815_v2 = vpack.c.bf16 %v799_v5, %v799_v5  ;;  %v755_v53 = vadd.f32 %v1512_v44, %v723_v21  ;;  %v892_v5 = vpop.permute.xlu2 %891 }
 0x19c   :  { %v542_v29 = vpop.f32.mrf.mxu1  ;;  %v942_v44 = vadd.f32 %v941_v17, %v940_v39  ;;  %v818_v54 = vpack.c.bf16 %v802_v62, %v802_v62 }
 0x19d   :  { %v573_v9 = vpack.c.bf16 %v542_v29, %v542_v29  ;;  %v812_v16 = vpack.c.bf16 %v796_v41, %v796_v41  ;;  %v724_v46 = vunpack.c.l.bf16 %v580_v40  ;;  %v943_v29 = vsel %vm935_vm1, %v923_v52, 0.0 }
 0x19e   :  { %v831_v23 = vunpack.c.l.bf16 %v815_v2  ;;  %v803_v59 = vmax.f32 %v755_v53, 0.0  ;;  %v944_v25 = vadd.f32 %v943_v29, %v942_v44 }
 0x19f   :  { %v717_v56 = vunpack.c.l.bf16 %v573_v9  ;;  %v828_v58 = vunpack.c.l.bf16 %v812_v16  ;;  %v756_v9 = vadd.f32 %v1524_v45, %v724_v46  ;;  %v902_v21 = vpop.permute.xlu1 %901 }
 0x1a0   :  { %v927_v27 = vmul.f32 %v882_v35, %v831_v23  ;;  %v819_v12 = vpack.c.bf16 %v803_v59, %v803_v59  ;;  %v974_v59 = vstv %s1564_s4 }
 0x1a1   :  { %v749_v22 = vadd.f32 %v733_v26, %v717_v56  ;;  %v924_v28 = vmul.f32 %v867_v36, %v828_v58  ;;  %v832_v36 = vunpack.c.l.bf16 %v816_v3  ;;  %v804_v57 = vmax.f32 %v756_v9, 0.0 }
 0x1a2   :  { %v562_v0 = vpop.f32.mrf.mxu2  ;;  %v951_v58 = vsel %vm935_vm1, %v927_v27, 0.0 }
 0x1a3   :  { %v797_v11 = vmax.f32 %v749_v22, 0.0  ;;  %v581_v26 = vpack.c.bf16 %v562_v0, %v562_v0  ;;  %v945_v43 = vsel %vm935_vm1, %v924_v28, 0.0  ;;  %v928_v7 = vmul.f32 %v887_v13, %v832_v36  ;;  %v907_v61 = vpop.permute.xlu2 %906 }
 0x1a4   :  { %v544_v55 = vpop.f32.mrf.mxu1  ;;  %v946_v18 = vadd.f32 %v945_v43, %v944_v25  ;;  %v820_v24 = vpack.c.bf16 %v804_v57, %v804_v57 }
 0x1a5   :  { %v813_v15 = vpack.c.bf16 %v797_v11, %v797_v11  ;;  %v574_v19 = vpack.c.bf16 %v544_v55, %v544_v55  ;;  %v725_v10 = vunpack.c.l.bf16 %v581_v26  ;;  %v834_v11 = vunpack.c.l.bf16 %v818_v54 }
 0x1a6   :  { %v953_v50 = vsel %vm935_vm1, %v928_v7, 0.0  ;;  %v836_v6 = vunpack.c.l.bf16 %v820_v24 }
 0x1a7   :  { %v829_v51 = vunpack.c.l.bf16 %v813_v15  ;;  %v718_v34 = vunpack.c.l.bf16 %v574_v19  ;;  %v835_v15 = vunpack.c.l.bf16 %v819_v12  ;;  %v917_v39 = vpop.permute.xlu1 %916 }
 0x1a8   :  { %v932_v48 = vmul.f32 %v907_v61, %v836_v6 }
 0x1a9   :  { %v750_v37 = vadd.f32 %v1510_v1, %v718_v34  ;;  %v925_v30 = vmul.f32 %v872_v14, %v829_v51  ;;  %v757_v1 = vadd.f32 %v741_v8, %v725_v10  ;;  %v833_v14 = vunpack.c.l.bf16 %v817_v47  ;;  %v897_v8 = vpop.permute.xlu0 %896 }
 0x1aa   :  { %v564_v41 = vpop.f32.mrf.mxu2  ;;  %v930_v49 = vmul.f32 %v897_v8, %v834_v11  ;;  %v931_v51 = vmul.f32 %v902_v21, %v835_v15  ;;  %v961_v3 = vsel %vm935_vm1, %v932_v48, 0.0 }
 0x1ab   :  { %v798_v31 = vmax.f32 %v750_v37, 0.0  ;;  %v582_v42 = vpack.c.bf16 %v564_v41, %v564_v41  ;;  %v947_v16 = vsel %vm935_vm1, %v925_v30, 0.0  ;;  %v805_v20 = vmax.f32 %v757_v1, 0.0 }
 0x1ac   :  { %v948_v40 = vadd.f32 %v947_v16, %v946_v18  ;;  %v959_v10 = vsel %vm935_vm1, %v931_v51, 0.0 }
 0x1ad   :  { %v814_v56 = vpack.c.bf16 %v798_v31, %v798_v31  ;;  %v726_v63 = vunpack.c.l.bf16 %v582_v42  ;;  %v821_v26 = vpack.c.bf16 %v805_v20, %v805_v20 }
 0x1af   :  { %v830_v45 = vunpack.c.l.bf16 %v814_v56  ;;  %v758_v22 = vadd.f32 %v1520_v60, %v726_v63  ;;  %v929_v60 = vmul.f32 %v892_v5, %v833_v14  ;;  %v837_v34 = vunpack.c.l.bf16 %v821_v26 }
 0x1b1   :  { %v926_v0 = vmul.f32 %v877_v4, %v830_v45  ;;  %v806_v38 = vmax.f32 %v758_v22, 0.0  ;;  %v955_v46 = vsel %vm935_vm1, %v929_v60, 0.0  ;;  %v957_v4 = vsel %vm935_vm1, %v930_v49, 0.0  ;;  %v912_v17 = vpop.permute.xlu0 %911 }
 0x1b2   :  { %v933_v37 = vmul.f32 %v912_v17, %v837_v34 }
 0x1b3   :  { %v949_v33 = vsel %vm935_vm1, %v926_v0, 0.0  ;;  %v822_v52 = vpack.c.bf16 %v806_v38, %v806_v38 }
 0x1b4   :  { %v950_v55 = vadd.f32 %v949_v33, %v948_v40  ;;  %v963_v41 = vsel %vm935_vm1, %v933_v37, 0.0 }
 0x1b5   :  { %v838_v53 = vunpack.c.l.bf16 %v822_v52 }
 0x1b6   :  { %v952_v19 = vadd.f32 %v951_v58, %v950_v55 }
 0x1b7   :  { %v934_v29 = vmul.f32 %v917_v39, %v838_v53 }
 0x1b8   :  { %v954_v32 = vadd.f32 %v953_v50, %v952_v19 }
 0x1b9   :  { %v965_v30 = vsel %vm935_vm1, %v934_v29, 0.0 }
 0x1ba   :  { %v956_v2 = vadd.f32 %v955_v46, %v954_v32 }
 0x1bc   :  { %v958_v28 = vadd.f32 %v957_v4, %v956_v2 }
 0x1be   :  { %v960_v35 = vadd.f32 %v959_v10, %v958_v28 }
 0x1c0   :  { %v962_v62 = vadd.f32 %v961_v3, %v960_v35 }
 0x1c2   :  { %v964_v9 = vadd.f32 %v963_v41, %v962_v62 }
 0x1c4   :  { %v966_v31 = vadd.f32 %v965_v30, %v964_v9 }
 0x1c6   :  { %v967_v42 = vrot.slane %v966_v31, 4 }
 0x1c8   :  { %v968_v23 = vadd.f32 %v967_v42, %v966_v31 }
 0x1ca   :  { %v969_v44 = vrot.slane %v968_v23, 2 }
 0x1cc   :  { %v970_v13 = vadd.f32 %v969_v44, %v968_v23 }
 0x1ce   :  { %v971_v47 = vrot.slane %v970_v13, 1 }
 0x1d0   :  { %v972_v43 = vadd.f32 %v971_v47, %v970_v13 }
 0x1d2   :  { %v975_v1 = vadd.f32 %v974_v59, %v972_v43 }
 0x1d4   :  { %977 = vst.msk [vmem:[#allocation3] sm:$0x1] %vm976_vm2, %v975_v1 }
 0x1d5   :  { %988 = dma.vmem_to_hbm [thread:$0]  %s984_s6, 16, %s986_s9, [#allocation4]  }
 0x1d6   :  { %1129 = dma.done.wait [#allocation4], 16  }
 0x1d7   :  { %1130 = vsyncadd [#allocation4], 4294967280 }
 0x1d8   :  { %993 = vsyncpa [#allocation4], 1 }

</bundles_post_ra>
